<compile_context>
chip_gen: v6e
topology: v6e:2x2x1
jax: 0.10.0
libtpu: 0.0.40
codegen_flags: <defaults>
</compile_context>

<pallas_src>
import math

import jax
import jax.numpy as jnp
from jax.experimental import pallas as pl
from jax.experimental.pallas import tpu as pltpu

# ---------------- model hyper-params (small, consistent with the module) ------
B = 2                        # batch
N = 8                        # sequence length (tokens)
C = 32                       # embed_dim
NUM_HEADS = 4
HEAD_DIM = C // NUM_HEADS    # 8
MLP_RATIO = 4.0
MLP_HIDDEN = int(C * MLP_RATIO)   # 128
LN_EPS = 1e-5
SCALE = HEAD_DIM ** (-0.5)
BN = B * N                   # 16  (flattened token axis)


def _layernorm(x, w, b):
    # PyTorch LayerNorm: biased variance over last dim, eps inside rsqrt.
    # w, b are (1, C) and broadcast against (BN, C).
    mean = jnp.mean(x, axis=-1, keepdims=True)
    var = jnp.mean((x - mean) ** 2, axis=-1, keepdims=True)
    return (x - mean) * jax.lax.rsqrt(var + LN_EPS) * w + b


def _gelu_exact(x):
    # nn.GELU() default: exact erf formulation.
    return 0.5 * x * (1.0 + jax.lax.erf(x * (1.0 / math.sqrt(2.0))))


def transformer_block_kernel(
    x_ref,                       # (BN, C)
    ln1_w_ref, ln1_b_ref,        # (1, C)
    qkv_w_ref, qkv_b_ref,        # (C, 3C), (1, 3C)   (SCALE folded into Q columns)
    out_w_ref, out_b_ref,        # (C, C), (1, C)
    ln2_w_ref, ln2_b_ref,        # (1, C)
    w1_ref, b1_ref,              # (C, MLP_HIDDEN), (1, MLP_HIDDEN)
    w2_ref, b2_ref,              # (MLP_HIDDEN, C), (1, C)
    o_ref,                       # (BN, C)
):
    x = x_ref[...]                                            # (BN, C)

    # ---- attention branch: x + attn(norm1(x)) ----
    xn = _layernorm(x, ln1_w_ref[...], ln1_b_ref[...])        # (BN, C)

    # Single fused, lane-dense QKV projection: (16,32) @ (32,96).
    qkv = jnp.dot(xn, qkv_w_ref[...],
                  preferred_element_type=jnp.float32) + qkv_b_ref[...]   # (BN, 3C)
    q = qkv[:, 0 * C:1 * C]                                   # (BN, C) — scale pre-folded
    k = qkv[:, 1 * C:2 * C]
    v = qkv[:, 2 * C:3 * C]

    # Per-head attention core (N=8, hd=8 — inherently tiny), statically unrolled.
    head_outs = []
    for h in range(NUM_HEADS):
        lo, hi = h * HEAD_DIM, (h + 1) * HEAD_DIM
        qh = q[:, lo:hi].reshape(B, N, HEAD_DIM)              # leading-dim split only
        kh = k[:, lo:hi].reshape(B, N, HEAD_DIM)
        vh = v[:, lo:hi].reshape(B, N, HEAD_DIM)

        s = jnp.einsum('bnd,bmd->bnm', qh, kh,
                       preferred_element_type=jnp.float32)    # (B, N, N)
        s = s - jnp.max(s, axis=-1, keepdims=True)
        p = jnp.exp(s)
        denom = jnp.sum(p, axis=-1, keepdims=True)            # (B, N, 1)
        # EUP approximate reciprocal + one Newton step -> ~full f32 precision.
        inv = pl.reciprocal(denom, approx=True)
        inv = inv * (2.0 - denom * inv)
        p = p * inv

        oh = jnp.einsum('bnm,bmd->bnd', p, vh,
                        preferred_element_type=jnp.float32)   # (B, N, hd)
        head_outs.append(oh.reshape(BN, HEAD_DIM))

    # Head-concat relayout -> (BN, C), then ONE lane-dense output projection.
    o_cat = jnp.concatenate(head_outs, axis=-1)               # (BN, C)
    attn_out = jnp.dot(o_cat, out_w_ref[...],
                       preferred_element_type=jnp.float32) + out_b_ref[...]

    x1 = x + attn_out

    # ---- MLP branch: x1 + mlp(norm2(x1)) ----
    xn2 = _layernorm(x1, ln2_w_ref[...], ln2_b_ref[...])
    h1 = jnp.dot(xn2, w1_ref[...],
                 preferred_element_type=jnp.float32) + b1_ref[...]       # (BN, 128)
    h1 = _gelu_exact(h1)
    mlp_out = jnp.dot(h1, w2_ref[...],
                      preferred_element_type=jnp.float32) + b2_ref[...]  # (BN, C)

    o_ref[...] = x1 + mlp_out


def transformer_block(x, params):
    """x: (B, N, C) float32. params: dict of weights (see init_params)."""
    # Fold the attention scale into the Q columns of the fused QKV projection
    # (wrapper-side, one extra f32 rounding per element).
    qkv_w = params["qkv_w"].at[:, :C].multiply(SCALE)          # (C, 3C)
    qkv_b = params["qkv_b"].at[:, :C].multiply(SCALE)          # (1, 3C)

    x_flat = x.reshape(BN, C)

    args = (
        x_flat,
        params["ln1_w"], params["ln1_b"],
        qkv_w, qkv_b,
        params["out_w"], params["out_b"],
        params["ln2_w"], params["ln2_b"],
        params["w1"], params["b1"],
        params["w2"], params["b2"],
    )

    # No grid: single invocation, every operand resident in VMEM (no pipeline
    # scaffolding, no double-buffering of never-rotating weights).
    def vmem_spec():
        return pl.BlockSpec(memory_space=pltpu.MemorySpace.VMEM)

    y_flat = pl.pallas_call(
        transformer_block_kernel,
        out_shape=jax.ShapeDtypeStruct((BN, C), jnp.float32),
        in_specs=[vmem_spec() for _ in args],
        out_specs=vmem_spec(),
    )(*args)
    return y_flat.reshape(B, N, C)


# ----------------------------- reference (pure JAX) ---------------------------
def transformer_block_ref(x, p):
    def ln(t, w, b):
        m = jnp.mean(t, axis=-1, keepdims=True)
        v = jnp.mean((t - m) ** 2, axis=-1, keepdims=True)
        return (t - m) / jnp.sqrt(v + LN_EPS) * w[0] + b[0]

    xn = ln(x, p["ln1_w"], p["ln1_b"])
    qkv = xn @ p["qkv_w"] + p["qkv_b"][0]                     # (B, N, 3C)
    qkv = qkv.reshape(B, N, 3, NUM_HEADS, HEAD_DIM).transpose(2, 0, 3, 1, 4)
    q, k, v = qkv[0], qkv[1], qkv[2]                          # (B, H, N, hd)
    attn = jnp.einsum("bhnd,bhmd->bhnm", q, k) * SCALE
    attn = jax.nn.softmax(attn, axis=-1)
    out = jnp.einsum("bhnm,bhmd->bhnd", attn, v)
    out = out.transpose(0, 2, 1, 3).reshape(B, N, C)
    out = out @ p["out_w"] + p["out_b"][0]
    x1 = x + out

    xn2 = ln(x1, p["ln2_w"], p["ln2_b"])
    h = xn2 @ p["w1"] + p["b1"][0]
    h = 0.5 * h * (1.0 + jax.lax.erf(h / jnp.sqrt(2.0)))
    mlp = h @ p["w2"] + p["b2"][0]
    return x1 + mlp


def init_params(key):
    ks = jax.random.split(key, 4)

    def lin(k, fan_in, fan_out):
        bound = 1.0 / math.sqrt(fan_in)
        kw, kb = jax.random.split(k)
        w = jax.random.uniform(kw, (fan_in, fan_out), jnp.float32, -bound, bound)
        b = jax.random.uniform(kb, (1, fan_out), jnp.float32, -bound, bound)
        return w, b

    qkv_w, qkv_b = lin(ks[0], C, 3 * C)
    out_w, out_b = lin(ks[1], C, C)
    w1, b1 = lin(ks[2], C, MLP_HIDDEN)
    w2, b2 = lin(ks[3], MLP_HIDDEN, C)
    return {
        "ln1_w": jnp.ones((1, C), jnp.float32),
        "ln1_b": jnp.zeros((1, C), jnp.float32),
        "qkv_w": qkv_w, "qkv_b": qkv_b,
        "out_w": out_w, "out_b": out_b,
        "ln2_w": jnp.ones((1, C), jnp.float32),
        "ln2_b": jnp.zeros((1, C), jnp.float32),
        "w1": w1, "b1": b1,
        "w2": w2, "b2": b2,
    }


if __name__ == "__main__":
    key = jax.random.PRNGKey(0)
    kx, kp = jax.random.split(key)
    x = jax.random.normal(kx, (B, N, C), jnp.float32)
    params = init_params(kp)

    y = transformer_block(x, params)
    y = jax.block_until_ready(y)

    y_ref = transformer_block_ref(x, params)
    assert y.shape == (B, N, C)
    assert jnp.allclose(y, y_ref, atol=1e-4, rtol=1e-4), (
        float(jnp.max(jnp.abs(y - y_ref))))
    print("KERNEL_OK")
</pallas_src>

<mosaic_0001>
module attributes {stable_mosaic.version = 11 : i64} {
  func.func @transformer_block_kernel(%arg0: memref<16x32xf32, #tpu.memory_space<vmem>>, %arg1: memref<1x32xf32, #tpu.memory_space<vmem>>, %arg2: memref<1x32xf32, #tpu.memory_space<vmem>>, %arg3: memref<32x96xf32, #tpu.memory_space<vmem>>, %arg4: memref<1x96xf32, #tpu.memory_space<vmem>>, %arg5: memref<32x32xf32, #tpu.memory_space<vmem>>, %arg6: memref<1x32xf32, #tpu.memory_space<vmem>>, %arg7: memref<1x32xf32, #tpu.memory_space<vmem>>, %arg8: memref<1x32xf32, #tpu.memory_space<vmem>>, %arg9: memref<32x128xf32, #tpu.memory_space<vmem>>, %arg10: memref<1x128xf32, #tpu.memory_space<vmem>>, %arg11: memref<128x32xf32, #tpu.memory_space<vmem>>, %arg12: memref<1x32xf32, #tpu.memory_space<vmem>>, %arg13: memref<16x32xf32, #tpu.memory_space<vmem>>) attributes {dimension_semantics = [], scalar_prefetch = 0 : i64, scratch_operands = 0 : i64, tpu.core_type = #tpu.core_type<tc>} {
    %c0 = arith.constant 0 : index
    %c0_0 = arith.constant 0 : index
    %0 = vector.load %arg0[%c0, %c0_0] : memref<16x32xf32, #tpu.memory_space<vmem>>, vector<16x32xf32>
    %c0_1 = arith.constant 0 : index
    %c0_2 = arith.constant 0 : index
    %1 = vector.load %arg1[%c0_1, %c0_2] : memref<1x32xf32, #tpu.memory_space<vmem>>, vector<1x32xf32>
    %c0_3 = arith.constant 0 : index
    %c0_4 = arith.constant 0 : index
    %2 = vector.load %arg2[%c0_3, %c0_4] : memref<1x32xf32, #tpu.memory_space<vmem>>, vector<1x32xf32>
    %cst = arith.constant dense<0.000000e+00> : vector<16xf32>
    %3 = vector.multi_reduction <add>, %0, %cst [1] : vector<16x32xf32> to vector<16xf32>
    %4 = vector.shape_cast %3 : vector<16xf32> to vector<16x1xf32>
    %cst_5 = arith.constant 3.200000e+01 : f32
    %5 = vector.broadcast %cst_5 : f32 to vector<16x1xf32>
    %6 = arith.divf %4, %5 : vector<16x1xf32>
    %7 = vector.broadcast %6 : vector<16x1xf32> to vector<16x32xf32>
    %8 = arith.subf %0, %7 : vector<16x32xf32>
    %9 = arith.mulf %8, %8 : vector<16x32xf32>
    %cst_6 = arith.constant dense<0.000000e+00> : vector<16xf32>
    %10 = vector.multi_reduction <add>, %9, %cst_6 [1] : vector<16x32xf32> to vector<16xf32>
    %11 = vector.shape_cast %10 : vector<16xf32> to vector<16x1xf32>
    %cst_7 = arith.constant 3.200000e+01 : f32
    %12 = vector.broadcast %cst_7 : f32 to vector<16x1xf32>
    %13 = arith.divf %11, %12 : vector<16x1xf32>
    %14 = vector.broadcast %6 : vector<16x1xf32> to vector<16x32xf32>
    %15 = arith.subf %0, %14 : vector<16x32xf32>
    %cst_8 = arith.constant 9.99999974E-6 : f32
    %16 = vector.broadcast %cst_8 : f32 to vector<16x1xf32>
    %17 = arith.addf %13, %16 : vector<16x1xf32>
    %18 = math.rsqrt %17 : vector<16x1xf32>
    %19 = vector.broadcast %18 : vector<16x1xf32> to vector<16x32xf32>
    %20 = arith.mulf %15, %19 : vector<16x32xf32>
    %21 = vector.broadcast %1 : vector<1x32xf32> to vector<16x32xf32>
    %22 = arith.mulf %20, %21 : vector<16x32xf32>
    %23 = vector.broadcast %2 : vector<1x32xf32> to vector<16x32xf32>
    %24 = arith.addf %22, %23 : vector<16x32xf32>
    %c0_9 = arith.constant 0 : index
    %c0_10 = arith.constant 0 : index
    %25 = vector.load %arg3[%c0_9, %c0_10] : memref<32x96xf32, #tpu.memory_space<vmem>>, vector<32x96xf32>
    %cst_11 = arith.constant dense<0.000000e+00> : vector<16x96xf32>
    %26 = tpu.matmul %24, %25, %cst_11 {dimension_numbers = #tpu.dot_dimension_numbers<[1], [0], [0], [1], [0, 0, 1, 1], [], []>} : vector<16x32xf32>, vector<32x96xf32>, vector<16x96xf32> -> vector<16x96xf32>
    %c0_12 = arith.constant 0 : index
    %c0_13 = arith.constant 0 : index
    %27 = vector.load %arg4[%c0_12, %c0_13] : memref<1x96xf32, #tpu.memory_space<vmem>>, vector<1x96xf32>
    %28 = vector.broadcast %27 : vector<1x96xf32> to vector<16x96xf32>
    %29 = arith.addf %26, %28 : vector<16x96xf32>
    %30 = vector.extract_strided_slice %29 {offsets = [0, 0], sizes = [16, 32], strides = [1, 1]} : vector<16x96xf32> to vector<16x32xf32>
    %31 = vector.extract_strided_slice %29 {offsets = [0, 32], sizes = [16, 32], strides = [1, 1]} : vector<16x96xf32> to vector<16x32xf32>
    %32 = vector.extract_strided_slice %29 {offsets = [0, 64], sizes = [16, 32], strides = [1, 1]} : vector<16x96xf32> to vector<16x32xf32>
    %33 = vector.extract_strided_slice %30 {offsets = [0, 0], sizes = [16, 8], strides = [1, 1]} : vector<16x32xf32> to vector<16x8xf32>
    %34 = vector.shape_cast %33 : vector<16x8xf32> to vector<2x8x8xf32>
    %35 = vector.extract_strided_slice %31 {offsets = [0, 0], sizes = [16, 8], strides = [1, 1]} : vector<16x32xf32> to vector<16x8xf32>
    %36 = vector.shape_cast %35 : vector<16x8xf32> to vector<2x8x8xf32>
    %37 = vector.extract_strided_slice %32 {offsets = [0, 0], sizes = [16, 8], strides = [1, 1]} : vector<16x32xf32> to vector<16x8xf32>
    %38 = vector.shape_cast %37 : vector<16x8xf32> to vector<2x8x8xf32>
    "tpu.trace_start"() <{level = 10 : i32, message = "bnd,bmd->bnm"}> : () -> ()
    %cst_14 = arith.constant dense<0.000000e+00> : vector<2x8x8xf32>
    %39 = tpu.matmul %34, %36, %cst_14 {dimension_numbers = #tpu.dot_dimension_numbers<[2], [2], [1], [1], [0, 0, 0, 1, 1, 1], [0], [0]>} : vector<2x8x8xf32>, vector<2x8x8xf32>, vector<2x8x8xf32> -> vector<2x8x8xf32>
    "tpu.trace_stop"() : () -> ()
    %cst_15 = arith.constant dense<0xFF800000> : vector<2x8xf32>
    %40 = vector.multi_reduction <maximumf>, %39, %cst_15 [2] : vector<2x8x8xf32> to vector<2x8xf32>
    %41 = vector.shape_cast %40 : vector<2x8xf32> to vector<2x8x1xf32>
    %42 = vector.broadcast %41 : vector<2x8x1xf32> to vector<2x8x8xf32>
    %43 = arith.subf %39, %42 : vector<2x8x8xf32>
    %44 = math.exp %43 : vector<2x8x8xf32>
    %cst_16 = arith.constant dense<0.000000e+00> : vector<2x8xf32>
    %45 = vector.multi_reduction <add>, %44, %cst_16 [2] : vector<2x8x8xf32> to vector<2x8xf32>
    %46 = vector.shape_cast %45 : vector<2x8xf32> to vector<2x8x1xf32>
    %47 = tpu.reciprocal %46 {approx = true} : vector<2x8x1xf32> -> vector<2x8x1xf32>
    %48 = arith.mulf %46, %47 : vector<2x8x1xf32>
    %cst_17 = arith.constant 2.000000e+00 : f32
    %49 = vector.broadcast %cst_17 : f32 to vector<2x8x1xf32>
    %50 = arith.subf %49, %48 : vector<2x8x1xf32>
    %51 = arith.mulf %47, %50 : vector<2x8x1xf32>
    %52 = vector.broadcast %51 : vector<2x8x1xf32> to vector<2x8x8xf32>
    %53 = arith.mulf %44, %52 : vector<2x8x8xf32>
    "tpu.trace_start"() <{level = 10 : i32, message = "bnm,bmd->bnd"}> : () -> ()
    %cst_18 = arith.constant dense<0.000000e+00> : vector<2x8x8xf32>
    %54 = tpu.matmul %53, %38, %cst_18 {dimension_numbers = #tpu.dot_dimension_numbers<[2], [1], [1], [2], [0, 0, 0, 1, 1, 2], [0], [0]>} : vector<2x8x8xf32>, vector<2x8x8xf32>, vector<2x8x8xf32> -> vector<2x8x8xf32>
    "tpu.trace_stop"() : () -> ()
    %55 = vector.shape_cast %54 : vector<2x8x8xf32> to vector<16x8xf32>
    %56 = vector.extract_strided_slice %30 {offsets = [0, 8], sizes = [16, 8], strides = [1, 1]} : vector<16x32xf32> to vector<16x8xf32>
    %57 = vector.shape_cast %56 : vector<16x8xf32> to vector<2x8x8xf32>
    %58 = vector.extract_strided_slice %31 {offsets = [0, 8], sizes = [16, 8], strides = [1, 1]} : vector<16x32xf32> to vector<16x8xf32>
    %59 = vector.shape_cast %58 : vector<16x8xf32> to vector<2x8x8xf32>
    %60 = vector.extract_strided_slice %32 {offsets = [0, 8], sizes = [16, 8], strides = [1, 1]} : vector<16x32xf32> to vector<16x8xf32>
    %61 = vector.shape_cast %60 : vector<16x8xf32> to vector<2x8x8xf32>
    "tpu.trace_start"() <{level = 10 : i32, message = "bnd,bmd->bnm"}> : () -> ()
    %cst_19 = arith.constant dense<0.000000e+00> : vector<2x8x8xf32>
    %62 = tpu.matmul %57, %59, %cst_19 {dimension_numbers = #tpu.dot_dimension_numbers<[2], [2], [1], [1], [0, 0, 0, 1, 1, 1], [0], [0]>} : vector<2x8x8xf32>, vector<2x8x8xf32>, vector<2x8x8xf32> -> vector<2x8x8xf32>
    "tpu.trace_stop"() : () -> ()
    %cst_20 = arith.constant dense<0xFF800000> : vector<2x8xf32>
    %63 = vector.multi_reduction <maximumf>, %62, %cst_20 [2] : vector<2x8x8xf32> to vector<2x8xf32>
    %64 = vector.shape_cast %63 : vector<2x8xf32> to vector<2x8x1xf32>
    %65 = vector.broadcast %64 : vector<2x8x1xf32> to vector<2x8x8xf32>
    %66 = arith.subf %62, %65 : vector<2x8x8xf32>
    %67 = math.exp %66 : vector<2x8x8xf32>
    %cst_21 = arith.constant dense<0.000000e+00> : vector<2x8xf32>
    %68 = vector.multi_reduction <add>, %67, %cst_21 [2] : vector<2x8x8xf32> to vector<2x8xf32>
    %69 = vector.shape_cast %68 : vector<2x8xf32> to vector<2x8x1xf32>
    %70 = tpu.reciprocal %69 {approx = true} : vector<2x8x1xf32> -> vector<2x8x1xf32>
    %71 = arith.mulf %69, %70 : vector<2x8x1xf32>
    %cst_22 = arith.constant 2.000000e+00 : f32
    %72 = vector.broadcast %cst_22 : f32 to vector<2x8x1xf32>
    %73 = arith.subf %72, %71 : vector<2x8x1xf32>
    %74 = arith.mulf %70, %73 : vector<2x8x1xf32>
    %75 = vector.broadcast %74 : vector<2x8x1xf32> to vector<2x8x8xf32>
    %76 = arith.mulf %67, %75 : vector<2x8x8xf32>
    "tpu.trace_start"() <{level = 10 : i32, message = "bnm,bmd->bnd"}> : () -> ()
    %cst_23 = arith.constant dense<0.000000e+00> : vector<2x8x8xf32>
    %77 = tpu.matmul %76, %61, %cst_23 {dimension_numbers = #tpu.dot_dimension_numbers<[2], [1], [1], [2], [0, 0, 0, 1, 1, 2], [0], [0]>} : vector<2x8x8xf32>, vector<2x8x8xf32>, vector<2x8x8xf32> -> vector<2x8x8xf32>
    "tpu.trace_stop"() : () -> ()
    %78 = vector.shape_cast %77 : vector<2x8x8xf32> to vector<16x8xf32>
    %79 = vector.extract_strided_slice %30 {offsets = [0, 16], sizes = [16, 8], strides = [1, 1]} : vector<16x32xf32> to vector<16x8xf32>
    %80 = vector.shape_cast %79 : vector<16x8xf32> to vector<2x8x8xf32>
    %81 = vector.extract_strided_slice %31 {offsets = [0, 16], sizes = [16, 8], strides = [1, 1]} : vector<16x32xf32> to vector<16x8xf32>
    %82 = vector.shape_cast %81 : vector<16x8xf32> to vector<2x8x8xf32>
    %83 = vector.extract_strided_slice %32 {offsets = [0, 16], sizes = [16, 8], strides = [1, 1]} : vector<16x32xf32> to vector<16x8xf32>
    %84 = vector.shape_cast %83 : vector<16x8xf32> to vector<2x8x8xf32>
    "tpu.trace_start"() <{level = 10 : i32, message = "bnd,bmd->bnm"}> : () -> ()
    %cst_24 = arith.constant dense<0.000000e+00> : vector<2x8x8xf32>
    %85 = tpu.matmul %80, %82, %cst_24 {dimension_numbers = #tpu.dot_dimension_numbers<[2], [2], [1], [1], [0, 0, 0, 1, 1, 1], [0], [0]>} : vector<2x8x8xf32>, vector<2x8x8xf32>, vector<2x8x8xf32> -> vector<2x8x8xf32>
    "tpu.trace_stop"() : () -> ()
    %cst_25 = arith.constant dense<0xFF800000> : vector<2x8xf32>
    %86 = vector.multi_reduction <maximumf>, %85, %cst_25 [2] : vector<2x8x8xf32> to vector<2x8xf32>
    %87 = vector.shape_cast %86 : vector<2x8xf32> to vector<2x8x1xf32>
    %88 = vector.broadcast %87 : vector<2x8x1xf32> to vector<2x8x8xf32>
    %89 = arith.subf %85, %88 : vector<2x8x8xf32>
    %90 = math.exp %89 : vector<2x8x8xf32>
    %cst_26 = arith.constant dense<0.000000e+00> : vector<2x8xf32>
    %91 = vector.multi_reduction <add>, %90, %cst_26 [2] : vector<2x8x8xf32> to vector<2x8xf32>
    %92 = vector.shape_cast %91 : vector<2x8xf32> to vector<2x8x1xf32>
    %93 = tpu.reciprocal %92 {approx = true} : vector<2x8x1xf32> -> vector<2x8x1xf32>
    %94 = arith.mulf %92, %93 : vector<2x8x1xf32>
    %cst_27 = arith.constant 2.000000e+00 : f32
    %95 = vector.broadcast %cst_27 : f32 to vector<2x8x1xf32>
    %96 = arith.subf %95, %94 : vector<2x8x1xf32>
    %97 = arith.mulf %93, %96 : vector<2x8x1xf32>
    %98 = vector.broadcast %97 : vector<2x8x1xf32> to vector<2x8x8xf32>
    %99 = arith.mulf %90, %98 : vector<2x8x8xf32>
    "tpu.trace_start"() <{level = 10 : i32, message = "bnm,bmd->bnd"}> : () -> ()
    %cst_28 = arith.constant dense<0.000000e+00> : vector<2x8x8xf32>
    %100 = tpu.matmul %99, %84, %cst_28 {dimension_numbers = #tpu.dot_dimension_numbers<[2], [1], [1], [2], [0, 0, 0, 1, 1, 2], [0], [0]>} : vector<2x8x8xf32>, vector<2x8x8xf32>, vector<2x8x8xf32> -> vector<2x8x8xf32>
    "tpu.trace_stop"() : () -> ()
    %101 = vector.shape_cast %100 : vector<2x8x8xf32> to vector<16x8xf32>
    %102 = vector.extract_strided_slice %30 {offsets = [0, 24], sizes = [16, 8], strides = [1, 1]} : vector<16x32xf32> to vector<16x8xf32>
    %103 = vector.shape_cast %102 : vector<16x8xf32> to vector<2x8x8xf32>
    %104 = vector.extract_strided_slice %31 {offsets = [0, 24], sizes = [16, 8], strides = [1, 1]} : vector<16x32xf32> to vector<16x8xf32>
    %105 = vector.shape_cast %104 : vector<16x8xf32> to vector<2x8x8xf32>
    %106 = vector.extract_strided_slice %32 {offsets = [0, 24], sizes = [16, 8], strides = [1, 1]} : vector<16x32xf32> to vector<16x8xf32>
    %107 = vector.shape_cast %106 : vector<16x8xf32> to vector<2x8x8xf32>
    "tpu.trace_start"() <{level = 10 : i32, message = "bnd,bmd->bnm"}> : () -> ()
    %cst_29 = arith.constant dense<0.000000e+00> : vector<2x8x8xf32>
    %108 = tpu.matmul %103, %105, %cst_29 {dimension_numbers = #tpu.dot_dimension_numbers<[2], [2], [1], [1], [0, 0, 0, 1, 1, 1], [0], [0]>} : vector<2x8x8xf32>, vector<2x8x8xf32>, vector<2x8x8xf32> -> vector<2x8x8xf32>
    "tpu.trace_stop"() : () -> ()
    %cst_30 = arith.constant dense<0xFF800000> : vector<2x8xf32>
    %109 = vector.multi_reduction <maximumf>, %108, %cst_30 [2] : vector<2x8x8xf32> to vector<2x8xf32>
    %110 = vector.shape_cast %109 : vector<2x8xf32> to vector<2x8x1xf32>
    %111 = vector.broadcast %110 : vector<2x8x1xf32> to vector<2x8x8xf32>
    %112 = arith.subf %108, %111 : vector<2x8x8xf32>
    %113 = math.exp %112 : vector<2x8x8xf32>
    %cst_31 = arith.constant dense<0.000000e+00> : vector<2x8xf32>
    %114 = vector.multi_reduction <add>, %113, %cst_31 [2] : vector<2x8x8xf32> to vector<2x8xf32>
    %115 = vector.shape_cast %114 : vector<2x8xf32> to vector<2x8x1xf32>
    %116 = tpu.reciprocal %115 {approx = true} : vector<2x8x1xf32> -> vector<2x8x1xf32>
    %117 = arith.mulf %115, %116 : vector<2x8x1xf32>
    %cst_32 = arith.constant 2.000000e+00 : f32
    %118 = vector.broadcast %cst_32 : f32 to vector<2x8x1xf32>
    %119 = arith.subf %118, %117 : vector<2x8x1xf32>
    %120 = arith.mulf %116, %119 : vector<2x8x1xf32>
    %121 = vector.broadcast %120 : vector<2x8x1xf32> to vector<2x8x8xf32>
    %122 = arith.mulf %113, %121 : vector<2x8x8xf32>
    "tpu.trace_start"() <{level = 10 : i32, message = "bnm,bmd->bnd"}> : () -> ()
    %cst_33 = arith.constant dense<0.000000e+00> : vector<2x8x8xf32>
    %123 = tpu.matmul %122, %107, %cst_33 {dimension_numbers = #tpu.dot_dimension_numbers<[2], [1], [1], [2], [0, 0, 0, 1, 1, 2], [0], [0]>} : vector<2x8x8xf32>, vector<2x8x8xf32>, vector<2x8x8xf32> -> vector<2x8x8xf32>
    "tpu.trace_stop"() : () -> ()
    %124 = vector.shape_cast %123 : vector<2x8x8xf32> to vector<16x8xf32>
    %125 = tpu.concatenate %55, %78, %101, %124 in 1 : vector<16x8xf32>, vector<16x8xf32>, vector<16x8xf32>, vector<16x8xf32> -> vector<16x32xf32>
    %c0_34 = arith.constant 0 : index
    %c0_35 = arith.constant 0 : index
    %126 = vector.load %arg5[%c0_34, %c0_35] : memref<32x32xf32, #tpu.memory_space<vmem>>, vector<32x32xf32>
    %cst_36 = arith.constant dense<0.000000e+00> : vector<16x32xf32>
    %127 = tpu.matmul %125, %126, %cst_36 {dimension_numbers = #tpu.dot_dimension_numbers<[1], [0], [0], [1], [0, 0, 1, 1], [], []>} : vector<16x32xf32>, vector<32x32xf32>, vector<16x32xf32> -> vector<16x32xf32>
    %c0_37 = arith.constant 0 : index
    %c0_38 = arith.constant 0 : index
    %128 = vector.load %arg6[%c0_37, %c0_38] : memref<1x32xf32, #tpu.memory_space<vmem>>, vector<1x32xf32>
    %129 = vector.broadcast %128 : vector<1x32xf32> to vector<16x32xf32>
    %130 = arith.addf %127, %129 : vector<16x32xf32>
    %131 = arith.addf %0, %130 : vector<16x32xf32>
    %c0_39 = arith.constant 0 : index
    %c0_40 = arith.constant 0 : index
    %132 = vector.load %arg7[%c0_39, %c0_40] : memref<1x32xf32, #tpu.memory_space<vmem>>, vector<1x32xf32>
    %c0_41 = arith.constant 0 : index
    %c0_42 = arith.constant 0 : index
    %133 = vector.load %arg8[%c0_41, %c0_42] : memref<1x32xf32, #tpu.memory_space<vmem>>, vector<1x32xf32>
    %cst_43 = arith.constant dense<0.000000e+00> : vector<16xf32>
    %134 = vector.multi_reduction <add>, %131, %cst_43 [1] : vector<16x32xf32> to vector<16xf32>
    %135 = vector.shape_cast %134 : vector<16xf32> to vector<16x1xf32>
    %cst_44 = arith.constant 3.200000e+01 : f32
    %136 = vector.broadcast %cst_44 : f32 to vector<16x1xf32>
    %137 = arith.divf %135, %136 : vector<16x1xf32>
    %138 = vector.broadcast %137 : vector<16x1xf32> to vector<16x32xf32>
    %139 = arith.subf %131, %138 : vector<16x32xf32>
    %140 = arith.mulf %139, %139 : vector<16x32xf32>
    %cst_45 = arith.constant dense<0.000000e+00> : vector<16xf32>
    %141 = vector.multi_reduction <add>, %140, %cst_45 [1] : vector<16x32xf32> to vector<16xf32>
    %142 = vector.shape_cast %141 : vector<16xf32> to vector<16x1xf32>
    %cst_46 = arith.constant 3.200000e+01 : f32
    %143 = vector.broadcast %cst_46 : f32 to vector<16x1xf32>
    %144 = arith.divf %142, %143 : vector<16x1xf32>
    %145 = vector.broadcast %137 : vector<16x1xf32> to vector<16x32xf32>
    %146 = arith.subf %131, %145 : vector<16x32xf32>
    %cst_47 = arith.constant 9.99999974E-6 : f32
    %147 = vector.broadcast %cst_47 : f32 to vector<16x1xf32>
    %148 = arith.addf %144, %147 : vector<16x1xf32>
    %149 = math.rsqrt %148 : vector<16x1xf32>
    %150 = vector.broadcast %149 : vector<16x1xf32> to vector<16x32xf32>
    %151 = arith.mulf %146, %150 : vector<16x32xf32>
    %152 = vector.broadcast %132 : vector<1x32xf32> to vector<16x32xf32>
    %153 = arith.mulf %151, %152 : vector<16x32xf32>
    %154 = vector.broadcast %133 : vector<1x32xf32> to vector<16x32xf32>
    %155 = arith.addf %153, %154 : vector<16x32xf32>
    %c0_48 = arith.constant 0 : index
    %c0_49 = arith.constant 0 : index
    %156 = vector.load %arg9[%c0_48, %c0_49] : memref<32x128xf32, #tpu.memory_space<vmem>>, vector<32x128xf32>
    %cst_50 = arith.constant dense<0.000000e+00> : vector<16x128xf32>
    %157 = tpu.matmul %155, %156, %cst_50 {dimension_numbers = #tpu.dot_dimension_numbers<[1], [0], [0], [1], [0, 0, 1, 1], [], []>} : vector<16x32xf32>, vector<32x128xf32>, vector<16x128xf32> -> vector<16x128xf32>
    %c0_51 = arith.constant 0 : index
    %c0_52 = arith.constant 0 : index
    %158 = vector.load %arg10[%c0_51, %c0_52] : memref<1x128xf32, #tpu.memory_space<vmem>>, vector<1x128xf32>
    %159 = vector.broadcast %158 : vector<1x128xf32> to vector<16x128xf32>
    %160 = arith.addf %157, %159 : vector<16x128xf32>
    %cst_53 = arith.constant 5.000000e-01 : f32
    %161 = vector.broadcast %cst_53 : f32 to vector<16x128xf32>
    %162 = arith.mulf %161, %160 : vector<16x128xf32>
    %cst_54 = arith.constant 0.707106769 : f32
    %163 = vector.broadcast %cst_54 : f32 to vector<16x128xf32>
    %164 = arith.mulf %160, %163 : vector<16x128xf32>
    %165 = math.erf %164 : vector<16x128xf32>
    %cst_55 = arith.constant 1.000000e+00 : f32
    %166 = vector.broadcast %cst_55 : f32 to vector<16x128xf32>
    %167 = arith.addf %166, %165 : vector<16x128xf32>
    %168 = arith.mulf %162, %167 : vector<16x128xf32>
    %c0_56 = arith.constant 0 : index
    %c0_57 = arith.constant 0 : index
    %169 = vector.load %arg11[%c0_56, %c0_57] : memref<128x32xf32, #tpu.memory_space<vmem>>, vector<128x32xf32>
    %cst_58 = arith.constant dense<0.000000e+00> : vector<16x32xf32>
    %170 = tpu.matmul %168, %169, %cst_58 {dimension_numbers = #tpu.dot_dimension_numbers<[1], [0], [0], [1], [0, 0, 1, 1], [], []>} : vector<16x128xf32>, vector<128x32xf32>, vector<16x32xf32> -> vector<16x32xf32>
    %c0_59 = arith.constant 0 : index
    %c0_60 = arith.constant 0 : index
    %171 = vector.load %arg12[%c0_59, %c0_60] : memref<1x32xf32, #tpu.memory_space<vmem>>, vector<1x32xf32>
    %172 = vector.broadcast %171 : vector<1x32xf32> to vector<16x32xf32>
    %173 = arith.addf %170, %172 : vector<16x32xf32>
    %174 = arith.addf %131, %173 : vector<16x32xf32>
    %c0_61 = arith.constant 0 : index
    %c0_62 = arith.constant 0 : index
    %175 = vector.load %arg13[%c0_61, %c0_62] : memref<16x32xf32, #tpu.memory_space<vmem>>, vector<16x32xf32>
    tpu.vector_store %arg13[%c0_61, %c0_62], %174 {strides = array<i32>} : memref<16x32xf32, #tpu.memory_space<vmem>>, vector<16x32xf32>,
    return
  }
}

</mosaic_0001>

<bundles_post_ra>
// kernel: tpu_custom_call.1
= control target key start
LH: loop header
LB: loop body
LE: loop exit
PB: predicated region body
PF: predicated region fallthrough
CT: control target
= control target key end

     0   :  { %vm49_vm0 = vcmask 261120   ;;  %s2630_s0 = inlined_call_operand.vmem [shape: f32[16,32], index: 0, kind: input, shape index: {}]   ;;  %s2631_s1 = inlined_call_operand.vmem [shape: f32[1,32], index: 1, kind: input, shape index: {}]   ;;  %s2632_s2 = inlined_call_operand.vmem [shape: f32[1,32], index: 2, kind: input, shape index: {}]   ;;  %s2633_s3 = inlined_call_operand.vmem [shape: f32[32,96], index: 3, kind: input, shape index: {}]   ;;  %s2634_s4 = inlined_call_operand.vmem [shape: f32[1,96], index: 4, kind: input, shape index: {}]   ;;  %s2635_s5 = inlined_call_operand.vmem [shape: f32[32,32], index: 5, kind: input, shape index: {}]   ;;  %s2636_s6 = inlined_call_operand.vmem [shape: f32[1,32], index: 6, kind: input, shape index: {}]   ;;  %s2637_s7 = inlined_call_operand.vmem [shape: f32[1,32], index: 7, kind: input, shape index: {}]   ;;  %s2638_s8 = inlined_call_operand.vmem [shape: f32[1,32], index: 8, kind: input, shape index: {}]   ;;  %s2639_s9 = inlined_call_operand.vmem [shape: f32[32,128], index: 9, kind: input, shape index: {}]   ;;  %s2640_s10 = inlined_call_operand.vmem [shape: f32[1,128], index: 10, kind: input, shape index: {}]   ;;  %s2641_s11 = inlined_call_operand.vmem [shape: f32[128,32], index: 11, kind: input, shape index: {}]   ;;  %s2642_s12 = inlined_call_operand.vmem [shape: f32[1,32], index: 12, kind: input, shape index: {}]   ;;  %s2643_s13 = inlined_call_operand.hbm [shape: f32[16,32], index: 13, kind: output, shape index: {}]  }
   0x1   :  { %v2347_v0 = vld [vmem:[%s2630_s0] sm:$0xff]  ;;  %v2352_v1 = vld [vmem:[%s2630_s0 + $0x8] sm:$0xff] }
   0x2   :  { %18 = vsyncpa [#allocation3], 0  ;;  %v50_v2 = vsel %vm49_vm0, %v2347_v0, 0.0  ;;  %v53_v3 = vsel %vm49_vm0, %v2352_v1, 0.0  ;;  %v96_v14 = vld [vmem:[%s2633_s3 + $0x18] sm:$0xff]  ;;  %v95_v15 = vld [vmem:[%s2633_s3 + $0x10] sm:$0xff] }
   0x3   :  { %51 = vadd.xlane.f32.xlu0 %v50_v2  ;;  %2024 = vmatprep.subr.mxu1 %v96_v14  ;;  %v94_v16 = vld [vmem:[%s2633_s3 + $0x8] sm:$0xff]  ;;  %v93_v17 = vld [vmem:[%s2633_s3] sm:$0xff]  ;;  %v2256_v34 = vmov 0.0   ;;  %vm2257_vm1 = vmmov 0   ;;  %s2258_s3 = smov 96   ;;  %vm188_vm2 = vcmask 64512  }
   0x4   :  { %2025 = vmatpush3.msra.mxu1 %v96_v14  ;;  %v1918_v25 = vld [vmem:[%s2631_s1] ss:$0 sm:$0xff]  ;;  %2045 = vmatprep.subr.mxu0 %v2256_v34  ;;  %s2260_s23 = smov 88   ;;  %s2261_s24 = smov 120   ;;  %vm1557_vm3 = vcmask 195584   ;;  %vm1554_vm4 = vcmask 130048  }
   0x5   :  { %2026 = vmatprep.subr.mxu1 %v95_v15  ;;  %v1919_v27 = vld [vmem:[%s2632_s2] ss:$0 sm:$0xff]  ;;  %2047 = vmatprep.mubr.msk.f32.mxu0 %vm2257_vm1, %v2256_v34  ;;  %s2262_s25 = smov 56   ;;  %s2263_s26 = smov 80  }
   0x6   :  { %2027 = vmatpush3.msra.mxu1 %v95_v15  ;;  %v1920_v35 = vld [vmem:[%s2634_s4] ss:$0 sm:$0xff]  ;;  %s2259_s4 = smov 64   ;;  %s2264_s27 = smov 112  }
   0x7   :  { %54 = vadd.xlane.f32.xlu0 %v53_v3  ;;  %2028 = vmatprep.subr.mxu1 %v94_v16  ;;  %s2265_s28 = smov 48   ;;  %s2266_s0 = smov 72  }
   0x8   :  { %2029 = vmatpush3.msra.mxu1 %v94_v16  ;;  %s2267_s29 = smov 104   ;;  %s2268_s30 = smov 40  }
   0x9   :  { %2030 = vmatprep.subr.mxu1 %v93_v17  ;;  %s2269_s14 = smov 8   ;;  %s2270_s15 = smov 16  }
   0xa   :  { %2031 = vmatpush3.msra.mxu1 %v93_v17  ;;  %s2271_s2 = smov 24  }
   0xb   :  { %2035 = vmatprep.subr.mxu1 %v2256_v34 }
  0x8c   :  { %v52_v4 = vpop.xlane.xlu0 %51 }
  0x8d   :  { %v57_v5 = vmul.f32 0.03125, %v52_v4 }
  0x8f   :  { %v59_v6 = vsub.f32 %v2347_v0, %v57_v5 }
  0x90   :  { %v55_v7 = vpop.xlane.xlu0 %54 }
  0x91   :  { %v58_v8 = vmul.f32 0.03125, %v55_v7  ;;  %v61_v9 = vmul.f32 %v59_v6, %v59_v6 }
  0x93   :  { %v60_v10 = vsub.f32 %v2352_v1, %v58_v8  ;;  %v63_v11 = vsel %vm49_vm0, %v61_v9, 0.0 }
  0x94   :  { %64 = vadd.xlane.f32.xlu1 %v63_v11 }
  0x95   :  { %v62_v12 = vmul.f32 %v60_v10, %v60_v10 }
  0x97   :  { %v66_v13 = vsel %vm49_vm0, %v62_v12, 0.0 }
  0x98   :  { %67 = vadd.xlane.f32.xlu1 %v66_v13 }
 0x11d   :  { %v65_v18 = vpop.xlane.xlu1 %64 }
 0x11e   :  { %v69_v19 = vmul.f32 0.03125, %v65_v18 }
 0x120   :  { %v71_v20 = vadd.f32 1e-05, %v69_v19 }
 0x121   :  { %v68_v21 = vpop.xlane.xlu1 %67 }
 0x122   :  { %2190 = vrsqrt.f32 %v71_v20  ;;  %v70_v22 = vmul.f32 0.03125, %v68_v21 }
 0x124   :  { %v72_v23 = vadd.f32 1e-05, %v70_v22 }
 0x126   :  { %2192 = vrsqrt.f32 %v72_v23 }
 0x12f   :  { %v2191_v24 = vpop.eup %2190 }
 0x130   :  { %v75_v26 = vmul.f32 %v2191_v24, %v59_v6 }
 0x132   :  { %v83_v28 = vmul.f32 %v1918_v25, %v75_v26 }
 0x133   :  { %v2193_v29 = vpop.eup %2192 }
 0x134   :  { %v76_v30 = vmul.f32 %v2193_v29, %v60_v10  ;;  %v91_v31 = vadd.f32 %v1919_v27, %v83_v28 }
 0x136   :  { %v84_v32 = vmul.f32 %v1918_v25, %v76_v30  ;;  %2032 = vmatprep.mubr.msk.f32.mxu1 %vm49_vm0, %v91_v31 }
 0x138   :  { %v92_v33 = vadd.f32 %v1919_v27, %v84_v32 }
 0x13a   :  { %2033 = vmatmul.mubr.msk.f32.vlgmr.msra.gmra.mxu1 %vm49_vm0, %v92_v33 }
 0x13b   :  { %2037 = vmatprep.mubr.msk.f32.mxu1 %vm2257_vm1, %v2256_v34 }
 0x1fa   :  { %v2034_v36 = vpop.f32.mrf.mxu1 }
 0x1fb   :  { %v2391_v37 = vadd.f32 %v2034_v36, %v1920_v35 }
 0x1fc   :  { %v176_v38 = vpop.f32.mrf.mxu1 }
 0x1fd   :  { %v2393_v39 = vadd.f32 %v1920_v35, %v176_v38  ;;  %264 = vrot.lane.b32.xlu1 %v2391_v37, %s2258_s3 }
 0x1ff   :  { %186 = vrot.lane.b32.xlu0 %v2393_v39, %s2258_s3 }
 0x26f   :  { %v265_v41 = vpop.permute.xlu1 %264 }
 0x271   :  { %v187_v40 = vpop.permute.xlu0 %186 }
 0x272   :  { %2036 = vmatpush3.xpose.msk.msra.mxu1 %vm188_vm2, %v187_v40 }
 0x273   :  { %2040 = vmatprep.subr.mxu1 %v2256_v34 }
 0x275   :  { %2038 = vmatmul.mubr.msk.f32.vlgmr.msra.gmra.mxu1 %vm188_vm2, %v2393_v39 }
 0x276   :  { %2041 = vmatpush3.xpose.msk.msra.mxu1 %vm188_vm2, %v265_v41  ;;  %2042 = vmatprep.mubr.msk.f32.mxu1 %vm2257_vm1, %v2256_v34 }
 0x277   :  { %2050 = vmatprep.subr.mxu1 %v2256_v34 }
 0x279   :  { %2043 = vmatmul.mubr.msk.f32.vlgmr.msra.gmra.mxu1 %vm188_vm2, %v2391_v37 }
 0x27a   :  { %2052 = vmatprep.mubr.msk.f32.mxu1 %vm2257_vm1, %v2256_v34 }
 0x335   :  { %v259_v42 = vpop.f32.mrf.mxu1 }
 0x336   :  { %v340_v43 = vsel %vm188_vm2, %v259_v42, -inf }
 0x337   :  { %341 = vmax.xlane.f32.xlu1 %v340_v43  ;;  %v2039_v44 = vpop.f32.mrf.mxu1 }
 0x339   :  { %v336_v45 = vpop.f32.mrf.mxu1 }
 0x33a   :  { %v343_v46 = vsel %vm188_vm2, %v336_v45, -inf }
 0x33b   :  { %344 = vmax.xlane.f32.xlu0 %v343_v46  ;;  %v2044_v47 = vpop.f32.mrf.mxu1 }
 0x348   :  { %444 = vrot.lane.b32.xlu1 %v2391_v37, %s2259_s4 }
 0x34c   :  { %522 = vrot.lane.b32.xlu1 %v2393_v39, %s2260_s23 }
 0x3c0   :  { %v342_v48 = vpop.xlane.xlu1 %341 }
 0x3c1   :  { %v346_v49 = vsub.f32 %v259_v42, %v342_v48 }
 0x3c3   :  { %v348_v50 = vmul.f32 1.442695, %v346_v49 }
 0x3c4   :  { %v445_v51 = vpop.permute.xlu1 %444  ;;  %v345_v52 = vpop.xlane.xlu0 %344 }
 0x3c5   :  { %2194 = vpow2.f32 %v348_v50  ;;  %v347_v53 = vsub.f32 %v336_v45, %v345_v52  ;;  %2051 = vmatpush3.msra.mxu1 %v445_v51 }
 0x3c6   :  { %2060 = vmatprep.subr.mxu1 %v2256_v34 }
 0x3c7   :  { %v350_v54 = vmul.f32 1.442695, %v347_v53 }
 0x3c8   :  { %v523_v59 = vpop.permute.xlu1 %522 }
 0x3c9   :  { %2196 = vpow2.f32 %v350_v54 }
 0x3d2   :  { %v2195_v55 = vpop.eup %2194 }
 0x3d3   :  { %v352_v56 = vsel %vm188_vm2, %v2195_v55, 0.0 }
 0x3d4   :  { %353 = vadd.xlane.f32.xlu0 %v352_v56 }
 0x3d6   :  { %v2197_v57 = vpop.eup %2196 }
 0x3d7   :  { %v355_v58 = vsel %vm188_vm2, %v2197_v57, 0.0 }
 0x3d8   :  { %356 = vadd.xlane.f32.xlu1 %v355_v58 }
 0x3e9   :  { %600 = vrot.lane.b32.xlu1 %v2391_v37, %s2260_s23 }
 0x3ea   :  { %368 = vrot.lane.b32.xlu0 %v2393_v39, %s2259_s4 }
 0x3ed   :  { %598 = vrot.lane.b32.xlu1 %v2391_v37, %s2261_s24 }
 0x3ee   :  { %520 = vrot.lane.b32.xlu0 %v2393_v39, %s2261_s24 }
 0x45d   :  { %v354_v60 = vpop.xlane.xlu0 %353 }
 0x45e   :  { %2198 = vrcp.f32 %v354_v60 }
 0x461   :  { %v357_v61 = vpop.xlane.xlu1 %356  ;;  %v369_v62 = vpop.permute.xlu0 %368 }
 0x462   :  { %2200 = vrcp.f32 %v357_v61  ;;  %2046 = vmatpush3.msra.mxu0 %v369_v62 }
 0x463   :  { %2055 = vmatprep.subr.mxu0 %v2256_v34 }
 0x465   :  { %v601_v10 = vpop.permute.xlu1 %600  ;;  %v521_v12 = vpop.permute.xlu0 %520 }
 0x469   :  { %v599_v13 = vpop.permute.xlu1 %598 }
 0x46b   :  { %v2199_v63 = vpop.eup %2198 }
 0x46c   :  { %v360_v2 = vmul.f32 %v2199_v63, %v354_v60 }
 0x46e   :  { %v362_v3 = vsub.f32 2.0, %v360_v2 }
 0x46f   :  { %v2201_v4 = vpop.eup %2200 }
 0x470   :  { %v364_v5 = vmul.f32 %v2199_v63, %v362_v3  ;;  %v361_v6 = vmul.f32 %v2201_v4, %v357_v61 }
 0x472   :  { %v366_v7 = vmul.f32 %v2195_v55, %v364_v5  ;;  %v363_v8 = vsub.f32 2.0, %v361_v6 }
 0x474   :  { %v365_v9 = vmul.f32 %v2201_v4, %v363_v8  ;;  %2048 = vmatmul.mubr.msk.f32.vlgmr.msra.gmra.mxu0 %vm188_vm2, %v366_v7 }
 0x475   :  { %2056 = vmatpush3.xpose.msk.msra.mxu0 %vm188_vm2, %v523_v59  ;;  %2057 = vmatprep.mubr.msk.f32.mxu0 %vm2257_vm1, %v2256_v34 }
 0x476   :  { %v367_v11 = vmul.f32 %v2197_v57, %v365_v9  ;;  %2065 = vmatprep.subr.mxu0 %v2256_v34 }
 0x478   :  { %2053 = vmatmul.mubr.msk.f32.vlgmr.msra.gmra.mxu1 %vm188_vm2, %v367_v11  ;;  %2058 = vmatmul.mubr.msk.f32.vlgmr.msra.gmra.mxu0 %vm188_vm2, %v521_v12 }
 0x479   :  { %2061 = vmatpush3.xpose.msk.msra.mxu1 %vm188_vm2, %v601_v10  ;;  %2062 = vmatprep.mubr.msk.f32.mxu1 %vm2257_vm1, %v2256_v34 }
 0x47a   :  { %2070 = vmatprep.subr.mxu1 %v2256_v34  ;;  %2067 = vmatprep.mubr.msk.f32.mxu0 %vm2257_vm1, %v2256_v34 }
 0x47c   :  { %2063 = vmatmul.mubr.msk.f32.vlgmr.msra.gmra.mxu1 %vm188_vm2, %v599_v13 }
 0x47d   :  { %2072 = vmatprep.mubr.msk.f32.mxu1 %vm2257_vm1, %v2256_v34 }
 0x534   :  { %v2437_v14 = vpop.f32.mrf.mxu0 }
 0x536   :  { %v2049_v15 = vpop.f32.mrf.mxu0 }
 0x538   :  { %v2439_v16 = vpop.f32.mrf.mxu1  ;;  %v594_v17 = vpop.f32.mrf.mxu0 }
 0x539   :  { %v676_v18 = vsel %vm188_vm2, %v594_v17, -inf }
 0x53a   :  { %677 = vmax.xlane.f32.xlu0 %v676_v18  ;;  %v2054_v19 = vpop.f32.mrf.mxu1  ;;  %v2059_v20 = vpop.f32.mrf.mxu0 }
 0x53c   :  { %v672_v21 = vpop.f32.mrf.mxu1 }
 0x53d   :  { %v679_v22 = vsel %vm188_vm2, %v672_v21, -inf }
 0x53e   :  { %680 = vmax.xlane.f32.xlu1 %v679_v22  ;;  %v2064_v23 = vpop.f32.mrf.mxu1 }
 0x54f   :  { %780 = vrot.lane.b32.xlu1 %v2391_v37, %s2262_s25 }
 0x553   :  { %858 = vrot.lane.b32.xlu1 %v2393_v39, %s2263_s26 }
 0x557   :  { %936 = vrot.lane.b32.xlu1 %v2391_v37, %s2263_s26 }
 0x55b   :  { %934 = vrot.lane.b32.xlu1 %v2391_v37, %s2264_s27 }
 0x5c3   :  { %v678_v24 = vpop.xlane.xlu0 %677 }
 0x5c4   :  { %v682_v25 = vsub.f32 %v594_v17, %v678_v24 }
 0x5c6   :  { %v684_v26 = vmul.f32 1.442695, %v682_v25 }
 0x5c7   :  { %v681_v27 = vpop.xlane.xlu1 %680 }
 0x5c8   :  { %2202 = vpow2.f32 %v684_v26  ;;  %v683_v28 = vsub.f32 %v672_v21, %v681_v27 }
 0x5ca   :  { %v686_v29 = vmul.f32 1.442695, %v683_v28 }
 0x5cb   :  { %v781_v30 = vpop.permute.xlu1 %780 }
 0x5cc   :  { %2204 = vpow2.f32 %v686_v29  ;;  %2071 = vmatpush3.msra.mxu1 %v781_v30 }
 0x5cd   :  { %2080 = vmatprep.subr.mxu1 %v2256_v34 }
 0x5cf   :  { %v859_v45 = vpop.permute.xlu1 %858 }
 0x5d3   :  { %v937_v51 = vpop.permute.xlu1 %936 }
 0x5d5   :  { %v2203_v31 = vpop.eup %2202 }
 0x5d6   :  { %v688_v32 = vsel %vm188_vm2, %v2203_v31, 0.0 }
 0x5d7   :  { %689 = vadd.xlane.f32.xlu0 %v688_v32  ;;  %v935_v54 = vpop.permute.xlu1 %934 }
 0x5d9   :  { %v2205_v33 = vpop.eup %2204 }
 0x5da   :  { %v691_v35 = vsel %vm188_vm2, %v2205_v33, 0.0 }
 0x5db   :  { %692 = vadd.xlane.f32.xlu0 %v691_v35 }
 0x5f1   :  { %704 = vrot.lane.b32.xlu0 %v2393_v39, %s2262_s25 }
 0x5f5   :  { %856 = vrot.lane.b32.xlu0 %v2393_v39, %s2264_s27 }
 0x660   :  { %v690_v36 = vpop.xlane.xlu0 %689 }
 0x661   :  { %2206 = vrcp.f32 %v690_v36 }
 0x664   :  { %v693_v38 = vpop.xlane.xlu0 %692 }
 0x665   :  { %2208 = vrcp.f32 %v693_v38 }
 0x668   :  { %v705_v40 = vpop.permute.xlu0 %704 }
 0x669   :  { %2066 = vmatpush3.msra.mxu0 %v705_v40 }
 0x66a   :  { %2075 = vmatprep.subr.mxu0 %v2256_v34 }
 0x66c   :  { %v857_v53 = vpop.permute.xlu0 %856 }
 0x66e   :  { %v2207_v41 = vpop.eup %2206 }
 0x66f   :  { %v696_v42 = vmul.f32 %v2207_v41, %v690_v36 }
 0x671   :  { %v698_v43 = vsub.f32 2.0, %v696_v42 }
 0x672   :  { %v2209_v44 = vpop.eup %2208 }
 0x673   :  { %v700_v46 = vmul.f32 %v2207_v41, %v698_v43  ;;  %v697_v47 = vmul.f32 %v2209_v44, %v693_v38 }
 0x675   :  { %v702_v48 = vmul.f32 %v2203_v31, %v700_v46  ;;  %v699_v49 = vsub.f32 2.0, %v697_v47 }
 0x677   :  { %v701_v50 = vmul.f32 %v2209_v44, %v699_v49  ;;  %2068 = vmatmul.mubr.msk.f32.vlgmr.msra.gmra.mxu0 %vm188_vm2, %v702_v48 }
 0x678   :  { %2076 = vmatpush3.xpose.msk.msra.mxu0 %vm188_vm2, %v859_v45  ;;  %2077 = vmatprep.mubr.msk.f32.mxu0 %vm2257_vm1, %v2256_v34 }
 0x679   :  { %v703_v52 = vmul.f32 %v2205_v33, %v701_v50  ;;  %2085 = vmatprep.subr.mxu0 %v2256_v34 }
 0x67b   :  { %2073 = vmatmul.mubr.msk.f32.vlgmr.msra.gmra.mxu1 %vm188_vm2, %v703_v52  ;;  %2078 = vmatmul.mubr.msk.f32.vlgmr.msra.gmra.mxu0 %vm188_vm2, %v857_v53 }
 0x67c   :  { %2081 = vmatpush3.xpose.msk.msra.mxu1 %vm188_vm2, %v937_v51  ;;  %2082 = vmatprep.mubr.msk.f32.mxu1 %vm2257_vm1, %v2256_v34 }
 0x67d   :  { %2090 = vmatprep.subr.mxu1 %v2256_v34  ;;  %2087 = vmatprep.mubr.msk.f32.mxu0 %vm2257_vm1, %v2256_v34 }
 0x67f   :  { %2083 = vmatmul.mubr.msk.f32.vlgmr.msra.gmra.mxu1 %vm188_vm2, %v935_v54 }
 0x680   :  { %2092 = vmatprep.mubr.msk.f32.mxu1 %vm2257_vm1, %v2256_v34 }
 0x737   :  { %v2469_v55 = vpop.f32.mrf.mxu0 }
 0x739   :  { %v2069_v56 = vpop.f32.mrf.mxu0 }
 0x73b   :  { %v2471_v57 = vpop.f32.mrf.mxu1  ;;  %v930_v58 = vpop.f32.mrf.mxu0 }
 0x73c   :  { %v1012_v59 = vsel %vm188_vm2, %v930_v58, -inf }
 0x73d   :  { %1013 = vmax.xlane.f32.xlu0 %v1012_v59  ;;  %v2074_v60 = vpop.f32.mrf.mxu1  ;;  %v2079_v61 = vpop.f32.mrf.mxu0 }
 0x73f   :  { %v1008_v62 = vpop.f32.mrf.mxu1 }
 0x740   :  { %v1015_v63 = vsel %vm188_vm2, %v1008_v62, -inf }
 0x741   :  { %1016 = vmax.xlane.f32.xlu1 %v1015_v63  ;;  %v2084_v2 = vpop.f32.mrf.mxu1 }
 0x752   :  { %1116 = vrot.lane.b32.xlu1 %v2391_v37, %s2265_s28 }
 0x756   :  { %1194 = vrot.lane.b32.xlu1 %v2393_v39, %s2266_s0 }
 0x75a   :  { %1272 = vrot.lane.b32.xlu1 %v2391_v37, %s2266_s0 }
 0x75e   :  { %1270 = vrot.lane.b32.xlu1 %v2391_v37, %s2267_s29 }
 0x7c6   :  { %v1014_v3 = vpop.xlane.xlu0 %1013 }
 0x7c7   :  { %v1018_v4 = vsub.f32 %v930_v58, %v1014_v3 }
 0x7c9   :  { %v1020_v5 = vmul.f32 1.442695, %v1018_v4 }
 0x7ca   :  { %v1017_v6 = vpop.xlane.xlu1 %1016 }
 0x7cb   :  { %2210 = vpow2.f32 %v1020_v5  ;;  %v1019_v7 = vsub.f32 %v1008_v62, %v1017_v6  ;;  %v1562_v6 = vld [vmem:[%s2635_s5 + $0x10] sm:$0xff] }
 0x7cd   :  { %v1022_v8 = vmul.f32 1.442695, %v1019_v7  ;;  %v1561_v7 = vld [vmem:[%s2635_s5 + $0x8] sm:$0xff] }
 0x7ce   :  { %v1117_v9 = vpop.permute.xlu1 %1116 }
 0x7cf   :  { %2212 = vpow2.f32 %v1022_v8  ;;  %2091 = vmatpush3.msra.mxu1 %v1117_v9  ;;  %v1560_v8 = vld [vmem:[%s2635_s5] sm:$0xff] }
 0x7d0   :  { %2100 = vmatprep.subr.mxu1 %v2256_v34 }
 0x7d2   :  { %v1195_v23 = vpop.permute.xlu1 %1194 }
 0x7d6   :  { %v1273_v29 = vpop.permute.xlu1 %1272 }
 0x7d8   :  { %v2211_v10 = vpop.eup %2210 }
 0x7d9   :  { %v1024_v11 = vsel %vm188_vm2, %v2211_v10, 0.0 }
 0x7da   :  { %1025 = vadd.xlane.f32.xlu0 %v1024_v11  ;;  %v1271_v32 = vpop.permute.xlu1 %1270 }
 0x7dc   :  { %v2213_v12 = vpop.eup %2212 }
 0x7dd   :  { %v1027_v13 = vsel %vm188_vm2, %v2213_v12, 0.0 }
 0x7de   :  { %1028 = vadd.xlane.f32.xlu0 %v1027_v13 }
 0x7f4   :  { %1040 = vrot.lane.b32.xlu0 %v2393_v39, %s2265_s28 }
 0x7f8   :  { %1192 = vrot.lane.b32.xlu0 %v2393_v39, %s2267_s29 }
 0x863   :  { %v1026_v15 = vpop.xlane.xlu0 %1025 }
 0x864   :  { %2214 = vrcp.f32 %v1026_v15 }
 0x867   :  { %v1029_v17 = vpop.xlane.xlu0 %1028 }
 0x868   :  { %2216 = vrcp.f32 %v1029_v17 }
 0x86b   :  { %v1041_v18 = vpop.permute.xlu0 %1040 }
 0x86c   :  { %2086 = vmatpush3.msra.mxu0 %v1041_v18 }
 0x86d   :  { %2095 = vmatprep.subr.mxu0 %v2256_v34 }
 0x86f   :  { %v1193_v31 = vpop.permute.xlu0 %1192 }
 0x871   :  { %v2215_v19 = vpop.eup %2214 }
 0x872   :  { %v1032_v20 = vmul.f32 %v2215_v19, %v1026_v15 }
 0x874   :  { %v1034_v21 = vsub.f32 2.0, %v1032_v20 }
 0x875   :  { %v2217_v22 = vpop.eup %2216 }
 0x876   :  { %v1036_v24 = vmul.f32 %v2215_v19, %v1034_v21  ;;  %v1033_v25 = vmul.f32 %v2217_v22, %v1029_v17 }
 0x878   :  { %v1038_v26 = vmul.f32 %v2211_v10, %v1036_v24  ;;  %v1035_v27 = vsub.f32 2.0, %v1033_v25 }
 0x87a   :  { %v1037_v28 = vmul.f32 %v2217_v22, %v1035_v27  ;;  %2088 = vmatmul.mubr.msk.f32.vlgmr.msra.gmra.mxu0 %vm188_vm2, %v1038_v26  ;;  %v1947_v27 = vld [vmem:[%s2636_s6] ss:$0 sm:$0xff] }
 0x87b   :  { %2096 = vmatpush3.xpose.msk.msra.mxu0 %vm188_vm2, %v1195_v23  ;;  %2097 = vmatprep.mubr.msk.f32.mxu0 %vm2257_vm1, %v2256_v34 }
 0x87c   :  { %v1039_v30 = vmul.f32 %v2213_v12, %v1037_v28  ;;  %2105 = vmatprep.subr.mxu0 %v2256_v34 }
 0x87e   :  { %2093 = vmatmul.mubr.msk.f32.vlgmr.msra.gmra.mxu1 %vm188_vm2, %v1039_v30  ;;  %2098 = vmatmul.mubr.msk.f32.vlgmr.msra.gmra.mxu0 %vm188_vm2, %v1193_v31 }
 0x87f   :  { %2101 = vmatpush3.xpose.msk.msra.mxu1 %vm188_vm2, %v1273_v29  ;;  %2102 = vmatprep.mubr.msk.f32.mxu1 %vm2257_vm1, %v2256_v34 }
 0x880   :  { %2110 = vmatprep.subr.mxu1 %v2256_v34  ;;  %2107 = vmatprep.mubr.msk.f32.mxu0 %vm2257_vm1, %v2256_v34 }
 0x882   :  { %2103 = vmatmul.mubr.msk.f32.vlgmr.msra.gmra.mxu1 %vm188_vm2, %v1271_v32 }
 0x883   :  { %2112 = vmatprep.mubr.msk.f32.mxu1 %vm2257_vm1, %v2256_v34 }
 0x93a   :  { %v1112_v33 = vpop.f32.mrf.mxu0 }
 0x93c   :  { %v2089_v35 = vpop.f32.mrf.mxu0 }
 0x93e   :  { %v1188_v36 = vpop.f32.mrf.mxu1  ;;  %v1266_v38 = vpop.f32.mrf.mxu0 }
 0x93f   :  { %v1348_v40 = vsel %vm188_vm2, %v1266_v38, -inf }
 0x940   :  { %1349 = vmax.xlane.f32.xlu0 %v1348_v40  ;;  %v2094_v41 = vpop.f32.mrf.mxu1  ;;  %v2099_v42 = vpop.f32.mrf.mxu0 }
 0x942   :  { %v1344_v43 = vpop.f32.mrf.mxu1 }
 0x943   :  { %v1351_v44 = vsel %vm188_vm2, %v1344_v43, -inf }
 0x944   :  { %1352 = vmax.xlane.f32.xlu1 %v1351_v44  ;;  %v2104_v45 = vpop.f32.mrf.mxu1 }
 0x945   :  { %v1701_v45 = vld [vmem:[%s2639_s9 + $0x18] sm:$0xff] }
 0x955   :  { %1452 = vrot.lane.b32.xlu1 %v2391_v37, %s2268_s30 }
 0x959   :  { %1530 = vrot.lane.b32.xlu1 %v2469_v55, %s2269_s14 }
 0x95d   :  { %1532 = vrot.lane.b32.xlu1 %v2471_v57, %s2269_s14 }
 0x961   :  { %1540 = vrot.lane.b32.xlu1 %v1188_v36, %s2270_s15 }
 0x9c9   :  { %v1350_v34 = vpop.xlane.xlu0 %1349 }
 0x9ca   :  { %v1354_v46 = vsub.f32 %v1266_v38, %v1350_v34  ;;  %v1700_v34 = vld [vmem:[%s2639_s9 + $0x10] sm:$0xff] }
 0x9cc   :  { %v1356_v47 = vmul.f32 1.442695, %v1354_v46  ;;  %v1699_v46 = vld [vmem:[%s2639_s9 + $0x8] sm:$0xff] }
 0x9cd   :  { %v1353_v48 = vpop.xlane.xlu1 %1352 }
 0x9ce   :  { %2218 = vpow2.f32 %v1356_v47  ;;  %v1355_v49 = vsub.f32 %v1344_v43, %v1353_v48  ;;  %v1698_v47 = vld [vmem:[%s2639_s9] sm:$0xff]  ;;  %v1815_v48 = vld [vmem:[%s2641_s11 + $0x78] sm:$0xff] }
 0x9d0   :  { %v1358_v50 = vmul.f32 1.442695, %v1355_v49  ;;  %v1814_v49 = vld [vmem:[%s2641_s11 + $0x70] sm:$0xff] }
 0x9d1   :  { %v1453_v51 = vpop.permute.xlu1 %1452 }
 0x9d2   :  { %2220 = vpow2.f32 %v1358_v50  ;;  %2111 = vmatpush3.msra.mxu1 %v1453_v51  ;;  %v1813_v50 = vld [vmem:[%s2641_s11 + $0x68] sm:$0xff] }
 0x9d5   :  { %v1531_v13 = vpop.permute.xlu1 %1530 }
 0x9d6   :  { %v1552_v18 = vsel %vm188_vm2, %v2437_v14, %v1531_v13  ;;  %v1802_v13 = vld [vmem:[%s2641_s11 + $0x10] sm:$0xff] }
 0x9d9   :  { %v1533_v15 = vpop.permute.xlu1 %1532 }
 0x9da   :  { %v1553_v23 = vsel %vm188_vm2, %v2439_v16, %v1533_v15  ;;  %v1801_v15 = vld [vmem:[%s2641_s11 + $0x8] sm:$0xff] }
 0x9db   :  { %v2219_v37 = vpop.eup %2218 }
 0x9dc   :  { %v1360_v52 = vsel %vm188_vm2, %v2219_v37, 0.0 }
 0x9dd   :  { %1361 = vadd.xlane.f32.xlu0 %v1360_v52  ;;  %v1541_v19 = vpop.permute.xlu1 %1540 }
 0x9de   :  { %v1556_v24 = vsel %vm1554_vm4, %v1553_v23, %v1541_v19 }
 0x9df   :  { %v2221_v53 = vpop.eup %2220 }
 0x9e0   :  { %v1363_v54 = vsel %vm188_vm2, %v2221_v53, 0.0 }
 0x9e1   :  { %1364 = vadd.xlane.f32.xlu0 %v1363_v54 }
 0x9f7   :  { %1376 = vrot.lane.b32.xlu0 %v2393_v39, %s2268_s30  ;;  %v1563_v39 = vld [vmem:[%s2635_s5 + $0x18] sm:$0xff] }
 0x9f8   :  { %2115 = vmatprep.subr.mxu1 %v1563_v39 }
 0x9fb   :  { %1538 = vrot.lane.b32.xlu0 %v1112_v33, %s2270_s15 }
 0xa66   :  { %v1362_v55 = vpop.xlane.xlu0 %1361 }
 0xa67   :  { %2222 = vrcp.f32 %v1362_v55 }
 0xa6a   :  { %v1365_v56 = vpop.xlane.xlu0 %1364 }
 0xa6b   :  { %2224 = vrcp.f32 %v1365_v56 }
 0xa6e   :  { %v1377_v57 = vpop.permute.xlu0 %1376 }
 0xa6f   :  { %2106 = vmatpush3.msra.mxu0 %v1377_v57  ;;  %v1950_v57 = vld [vmem:[%s2637_s7] ss:$0 sm:$0xff]  ;;  %s2272_s7 = smov [#allocation2]  }
 0xa70   :  { %2137 = vmatprep.subr.mxu0 %v1815_v48  ;;  %s1907_s1 = sshll.u32 %s2272_s7, 4  ;;  %s1908_s1 = int_to_ptr.vmem [resolvable:$true] %s1907_s1 }
 0xa71   :  { %p2239_p1 = scmp.lt.s32.totalorder %s1908_s1, %s1908_s1 }
 0xa72   :  { %v1539_v17 = vpop.permute.xlu0 %1538 }
 0xa73   :  { %v1555_v20 = vsel %vm1554_vm4, %v1552_v18, %v1539_v17  ;;  %v1800_v17 = vld [vmem:[%s2641_s11] sm:$0xff] }
 0xa74   :  { %v2223_v58 = vpop.eup %2222  ;;  %v1952_v18 = vld [vmem:[%s2640_s10] ss:$0 sm:$0xff] }
 0xa75   :  { %v1368_v59 = vmul.f32 %v2223_v58, %v1362_v55 }
 0xa77   :  { %v1370_v60 = vsub.f32 2.0, %v1368_v59  ;;  %v1951_v59 = vld [vmem:[%s2638_s8] ss:$0 sm:$0xff]  ;;  %s2234_s8 = scalar_lea.vmem %s1908_s1, 256 }
 0xa78   :  { %v2225_v61 = vpop.eup %2224  ;;  %p2235_p0 = scmp.ne.s32.totalorder %s1908_s1, %s2234_s8  ;;  %p2240_p2 = scmp.lt.s32.totalorder %s2234_s8, %s2234_s8 }
 0xa79   :  { %v1372_v62 = vmul.f32 %v2223_v58, %v1370_v60  ;;  %v1369_v63 = vmul.f32 %v2225_v61, %v1365_v56 }
 0xa7a   :  { %p2241_p3 = por %p2240_p2, %p2239_p1 }
 0xa7b   :  { %v1374_v2 = vmul.f32 %v2219_v37, %v1372_v62  ;;  %v1371_v3 = vsub.f32 2.0, %v1369_v63 }
 0xa7c   :  { %p2242_p4 = pnand %p2241_p3, %p2235_p0 }
 0xa7d   :  { %v1373_v4 = vmul.f32 %v2225_v61, %v1371_v3  ;;  %2108 = vmatmul.mubr.msk.f32.vlgmr.msra.gmra.mxu0 %vm188_vm2, %v1374_v2 }
 0xa7e   :  { %2138 = vmatpush3.msra.mxu0 %v1815_v48 }
 0xa7f   :  { %v1375_v5 = vmul.f32 %v2221_v53, %v1373_v4  ;;  %2139 = vmatprep.subr.mxu0 %v1814_v49  ;;  %v1812_v4 = vld [vmem:[%s2641_s11 + $0x60] sm:$0xff] }
 0xa80   :  { %2140 = vmatpush3.msra.mxu0 %v1814_v49 }
 0xa81   :  { %2113 = vmatmul.mubr.msk.f32.vlgmr.msra.gmra.mxu1 %vm188_vm2, %v1375_v5  ;;  %2141 = vmatprep.subr.mxu0 %v1813_v50  ;;  %v1811_v5 = vld [vmem:[%s2641_s11 + $0x58] sm:$0xff] }
 0xa82   :  { %2116 = vmatpush3.msra.mxu1 %v1563_v39  ;;  %2142 = vmatpush3.msra.mxu0 %v1813_v50  ;;  %v1810_v39 = vld [vmem:[%s2641_s11 + $0x50] sm:$0xff] }
 0xa83   :  { %2117 = vmatprep.subr.mxu1 %v1562_v6  ;;  %2143 = vmatprep.subr.mxu0 %v1812_v4 }
 0xa84   :  { %2118 = vmatpush3.msra.mxu1 %v1562_v6  ;;  %2144 = vmatpush3.msra.mxu0 %v1812_v4  ;;  %v1809_v6 = vld [vmem:[%s2641_s11 + $0x48] sm:$0xff] }
 0xa85   :  { %2119 = vmatprep.subr.mxu1 %v1561_v7  ;;  %2145 = vmatprep.subr.mxu0 %v1811_v5 }
 0xa86   :  { %2120 = vmatpush3.msra.mxu1 %v1561_v7  ;;  %2146 = vmatpush3.msra.mxu0 %v1811_v5  ;;  %v1808_v7 = vld [vmem:[%s2641_s11 + $0x40] sm:$0xff] }
 0xa87   :  { %2121 = vmatprep.subr.mxu1 %v1560_v8  ;;  %2147 = vmatprep.subr.mxu0 %v1810_v39 }
 0xa88   :  { %2122 = vmatpush3.msra.mxu1 %v1560_v8  ;;  %2148 = vmatpush3.msra.mxu0 %v1810_v39  ;;  %v1807_v8 = vld [vmem:[%s2641_s11 + $0x38] sm:$0xff] }
 0xa89   :  { %2126 = vmatprep.subr.mxu1 %v1701_v45  ;;  %2149 = vmatprep.subr.mxu0 %v1809_v6 }
 0xa8a   :  { %2150 = vmatpush3.msra.mxu0 %v1809_v6 }
 0xa8b   :  { %2151 = vmatprep.subr.mxu0 %v1808_v7 }
 0xa8c   :  { %2152 = vmatpush3.msra.mxu0 %v1808_v7 }
 0xa8d   :  { %2153 = vmatprep.subr.mxu0 %v1807_v8 }
 0xa8e   :  { %2154 = vmatpush3.msra.mxu0 %v1807_v8 }
 0xb3d   :  { %v1448_v9 = vpop.f32.mrf.mxu0 }
 0xb3e   :  { %1546 = vrot.lane.b32.xlu0 %v1448_v9, %s2271_s2  ;;  %v1806_v9 = vld [vmem:[%s2641_s11 + $0x30] sm:$0xff] }
 0xb3f   :  { %v2109_v10 = vpop.f32.mrf.mxu0  ;;  %2155 = vmatprep.subr.mxu0 %v1806_v9 }
 0xb40   :  { %2156 = vmatpush3.msra.mxu0 %v1806_v9  ;;  %v1805_v10 = vld [vmem:[%s2641_s11 + $0x28] sm:$0xff] }
 0xb41   :  { %v1524_v11 = vpop.f32.mrf.mxu1  ;;  %2157 = vmatprep.subr.mxu0 %v1805_v10 }
 0xb42   :  { %1548 = vrot.lane.b32.xlu1 %v1524_v11, %s2271_s2  ;;  %2158 = vmatpush3.msra.mxu0 %v1805_v10  ;;  %v1804_v11 = vld [vmem:[%s2641_s11 + $0x20] sm:$0xff] }
 0xb43   :  { %v2114_v12 = vpop.f32.mrf.mxu1  ;;  %2159 = vmatprep.subr.mxu0 %v1804_v11 }
 0xb44   :  { %2160 = vmatpush3.msra.mxu0 %v1804_v11  ;;  %v1803_v12 = vld [vmem:[%s2641_s11 + $0x18] sm:$0xff] }
 0xb45   :  { %2161 = vmatprep.subr.mxu0 %v1803_v12 }
 0xb46   :  { %2162 = vmatpush3.msra.mxu0 %v1803_v12 }
 0xb47   :  { %2163 = vmatprep.subr.mxu0 %v1802_v13 }
 0xb48   :  { %2164 = vmatpush3.msra.mxu0 %v1802_v13 }
 0xb49   :  { %2165 = vmatprep.subr.mxu0 %v1801_v15 }
 0xb4a   :  { %2166 = vmatpush3.msra.mxu0 %v1801_v15 }
 0xb4b   :  { %2167 = vmatprep.subr.mxu0 %v1800_v17 }
 0xb4c   :  { %2168 = vmatpush3.msra.mxu0 %v1800_v17 }
 0xbb0   :  { %v1547_v21 = vpop.permute.xlu0 %1546 }
 0xbb1   :  { %v1558_v22 = vsel %vm1557_vm3, %v1555_v20, %v1547_v21 }
 0xbb2   :  { %2123 = vmatprep.mubr.msk.f32.mxu1 %vm49_vm0, %v1558_v22 }
 0xbb4   :  { %v1549_v25 = vpop.permute.xlu1 %1548 }
 0xbb5   :  { %v1559_v26 = vsel %vm1557_vm3, %v1556_v24, %v1549_v25 }
 0xbb6   :  { %2124 = vmatmul.mubr.msk.f32.vlgmr.msra.gmra.mxu1 %vm49_vm0, %v1559_v26 }
 0xbb7   :  { %2127 = vmatpush3.msra.mxu1 %v1701_v45 }
 0xbb8   :  { %2128 = vmatprep.subr.mxu1 %v1700_v34 }
 0xbb9   :  { %2129 = vmatpush3.msra.mxu1 %v1700_v34 }
 0xbba   :  { %2130 = vmatprep.subr.mxu1 %v1699_v46 }
 0xbbb   :  { %2131 = vmatpush3.msra.mxu1 %v1699_v46 }
 0xbbc   :  { %2132 = vmatprep.subr.mxu1 %v1698_v47 }
 0xbbd   :  { %2133 = vmatpush3.msra.mxu1 %v1698_v47 }
 0xc76   :  { %v2125_v14 = vpop.f32.mrf.mxu1 }
 0xc77   :  { %v1649_v28 = vadd.f32 %v2125_v14, %v1947_v27 }
 0xc78   :  { %v1643_v29 = vpop.f32.mrf.mxu1 }
 0xc79   :  { %v2535_v30 = vadd.f32 %v1649_v28, %v2352_v1  ;;  %v1644_v31 = vadd.f32 %v1947_v27, %v1643_v29 }
 0xc7b   :  { %v2538_v32 = vadd.f32 %v1644_v31, %v2347_v0  ;;  %v1659_v16 = vsel %vm49_vm0, %v2535_v30, 0.0 }
 0xc7c   :  { %1660 = vadd.xlane.f32.xlu1 %v1659_v16 }
 0xc7d   :  { %v1656_v33 = vsel %vm49_vm0, %v2538_v32, 0.0 }
 0xc7e   :  { %1657 = vadd.xlane.f32.xlu0 %v1656_v33  ;;  %v1955_v33 = vld [vmem:[%s2642_s12] ss:$0 sm:$0xff] }
 0xd05   :  { %v1661_v35 = vpop.xlane.xlu1 %1660 }
 0xd06   :  { %v1663_v36 = vmul.f32 0.03125, %v1661_v35 }
 0xd07   :  { %v1658_v38 = vpop.xlane.xlu0 %1657 }
 0xd08   :  { %v1662_v40 = vmul.f32 0.03125, %v1658_v38  ;;  %v1665_v41 = vsub.f32 %v2535_v30, %v1663_v36 }
 0xd0a   :  { %v1664_v1 = vsub.f32 %v2538_v32, %v1662_v40  ;;  %v1667_v43 = vmul.f32 %v1665_v41, %v1665_v41 }
 0xd0c   :  { %v1666_v42 = vmul.f32 %v1664_v1, %v1664_v1  ;;  %v1671_v44 = vsel %vm49_vm0, %v1667_v43, 0.0 }
 0xd0e   :  { %v1668_v0 = vsel %vm49_vm0, %v1666_v42, 0.0 }
 0xd0f   :  { %1669 = vadd.xlane.f32.xlu0 %v1668_v0 }
 0xd13   :  { %1672 = vadd.xlane.f32.xlu0 %v1671_v44 }
 0xd98   :  { %v1670_v51 = vpop.xlane.xlu0 %1669 }
 0xd99   :  { %v1674_v37 = vmul.f32 0.03125, %v1670_v51 }
 0xd9b   :  { %v1676_v52 = vadd.f32 1e-05, %v1674_v37 }
 0xd9c   :  { %v1673_v53 = vpop.xlane.xlu0 %1672 }
 0xd9d   :  { %2226 = vrsqrt.f32 %v1676_v52  ;;  %v1675_v54 = vmul.f32 0.03125, %v1673_v53 }
 0xd9f   :  { %v1677_v55 = vadd.f32 1e-05, %v1675_v54 }
 0xda1   :  { %2228 = vrsqrt.f32 %v1677_v55 }
 0xdaa   :  { %v2227_v56 = vpop.eup %2226 }
 0xdab   :  { %v1680_v58 = vmul.f32 %v2227_v56, %v1664_v1 }
 0xdad   :  { %v1688_v60 = vmul.f32 %v1950_v57, %v1680_v58 }
 0xdae   :  { %v2229_v61 = vpop.eup %2228 }
 0xdaf   :  { %v1681_v62 = vmul.f32 %v2229_v61, %v1665_v41  ;;  %v1696_v63 = vadd.f32 %v1951_v59, %v1688_v60 }
 0xdb1   :  { %v1689_v2 = vmul.f32 %v1950_v57, %v1681_v62  ;;  %2134 = vmatprep.mubr.msk.f32.mxu1 %vm49_vm0, %v1696_v63 }
 0xdb3   :  { %v1697_v3 = vadd.f32 %v1951_v59, %v1689_v2 }
 0xdb5   :  { %2135 = vmatmul.mubr.msk.f32.vlgmr.msra.gmra.mxu1 %vm49_vm0, %v1697_v3 }
 0xe75   :  { %v2136_v19 = vpop.f32.mrf.mxu1 }
 0xe76   :  { %v1787_v20 = vadd.f32 %v2136_v19, %v1952_v18 }
 0xe77   :  { %v1781_v21 = vpop.f32.mrf.mxu1 }
 0xe78   :  { %v1793_v22 = vmul.f32 0.70710677, %v1787_v20  ;;  %v1782_v23 = vadd.f32 %v1952_v18, %v1781_v21  ;;  %v1791_v29 = vmul.f32 0.5, %v1787_v20 }
 0xe7a   :  { %2230 = verf.f32 %v1793_v22  ;;  %v1792_v24 = vmul.f32 0.70710677, %v1782_v23  ;;  %v1790_v14 = vmul.f32 0.5, %v1782_v23 }
 0xe7c   :  { %2232 = verf.f32 %v1792_v24 }
 0xe87   :  { %v2231_v25 = vpop.eup %2230 }
 0xe88   :  { %v1797_v27 = vadd.f32 1.0, %v2231_v25 }
 0xe89   :  { %v2233_v26 = vpop.eup %2232 }
 0xe8a   :  { %v1796_v28 = vadd.f32 1.0, %v2233_v26  ;;  %v1799_v16 = vmul.f32 %v1797_v27, %v1791_v29 }
 0xe8c   :  { %v1798_v31 = vmul.f32 %v1796_v28, %v1790_v14 }
 0xe8e   :  { %2169 = vmatprep.mubr.f32.mxu0 %v1798_v31 }
 0xe8f   :  { %2170 = vmatmul.mubr.f32.vlgmr.msra.gmra.mxu0 %v1799_v16 }
 0xf4f   :  { %v2171_v35 = vpop.f32.mrf.mxu0 }
 0xf50   :  { %v1895_v36 = vadd.f32 %v2171_v35, %v1955_v33 }
 0xf51   :  { %v1889_v38 = vpop.f32.mrf.mxu0 }
 0xf52   :  { %v1899_v40 = vadd.f32 %v1895_v36, %v2535_v30  ;;  %v1890_v41 = vadd.f32 %v1955_v33, %v1889_v38 }
 0xf54   :  { %1901 = vst.msk [vmem:[#allocation2 + $0x8] sm:$0xff] %vm49_vm0, %v1899_v40  ;;  %v1898_v1 = vadd.f32 %v1890_v41, %v2538_v32 }
 0xf56   :  { %1900 = vst.msk [vmem:[#allocation2] sm:$0xff] %vm49_vm0, %v1898_v1 }
 0xf57   :  { %2245 = shalt.err (!%p2242_p4)
}
 0xf58   :  { %s2273_s12 = smov 128  }
 0xf59   :  { %1913 = dma.vmem_to_hbm [thread:$0]  %s1908_s1, 256, %s2643_s13, [#allocation3], %s2273_s12, %s2273_s12, %s2269_s14  }
 0xf5a   :  { %2254 = dma.done.wait [#allocation3], 256  }
 0xf5b   :  { %2255 = vsyncadd [#allocation3], 4294967040 }
 0xf5c   :  { %1917 = vsyncpa [#allocation3], 1 }

</bundles_post_ra>
